<compile_context>
chip_gen: v7x
topology: tpu7x:2x2x1
jax: 0.10.0
libtpu: 0.0.40
codegen_flags: <defaults>
</compile_context>

<pallas_src>
import functools

import jax
import jax.numpy as jnp
from jax import lax
from jax.experimental import pallas as pl
from jax.experimental.pallas import tpu as pltpu


def meanpool_conv_kernel(x_ref, w_ref, b_ref, o_ref, patches_ref, *, k, n, hp, wp, c4):
    # x_ref:       (N, Hp+2p, Wp+2p, 4*Cin)   space-to-depth input, spatially zero-padded
    # w_ref:       (k*k*4*Cin, Cout_pad)      im2col weights, 0.25 pool scale folded in
    # b_ref:       (1, Cout_pad)              bias, zero-padded to 128 lanes (f32)
    # o_ref:       (N*Hp*Wp, Cout_pad)        lane-dense output slab
    # patches_ref: VMEM (N, Hp, Wp, k*k*4*Cin) im2col LHS, built in place

    # Build the im2col LHS with direct static-offset window writes (no concatenate,
    # no pooling arithmetic: the 2x2 mean lives in the weights / MXU contraction).
    for kh in range(k):
        for kw in range(k):
            t = kh * k + kw
            patches_ref[:, :, :, t * c4:(t + 1) * c4] = x_ref[:, kh:kh + hp, kw:kw + wp, :]

    m = n * hp * wp
    kdim = k * k * c4
    patches = patches_ref[...].reshape(m, kdim)   # (M, K); Wp == 8 keeps this tile-aligned here

    # Single MXU matmul (batch folded into M), f32 accumulation, lane-dense unmasked store.
    acc = jnp.dot(patches, w_ref[...], preferred_element_type=jnp.float32)
    o_ref[...] = (acc + b_ref[...]).astype(o_ref.dtype)


def prepare_mean_pool_conv_params(w_oihw, b, *, k_size, compute_dtype=jnp.float32):
    """Hoisted (once-per-model) parameter prep: fold the 0.25 mean-pool scale into the
    weights, replicate over the 2x2 space-to-depth parities, flatten to an im2col matrix
    and zero-pad Cout to a full 128-lane block.  Use compute_dtype=jnp.bfloat16 for bf16
    activations (f32 accumulation happens in the kernel)."""
    cout, cin, kh, kw = w_oihw.shape
    assert kh == kw == k_size
    LANE = 128
    cout_pad = ((cout + LANE - 1) // LANE) * LANE
    kdim = k_size * k_size * 4 * cin

    w_hwio = jnp.transpose(w_oihw, (2, 3, 1, 0))                        # (k, k, Cin, Cout)
    # Replicate over the 4 pooling parities (dy, dx); each carries the same 0.25*w tap.
    w_s2d = jnp.broadcast_to(w_hwio[:, :, None, :, :],
                             (k_size, k_size, 4, cin, cout))            # (k, k, 4, Cin, Cout)
    w2 = (w_s2d.reshape(kdim, cout) * 0.25).astype(compute_dtype)
    w2 = jnp.pad(w2, ((0, 0), (0, cout_pad - cout)))

    b2 = jnp.pad(b.astype(jnp.float32).reshape(1, cout),
                 ((0, 0), (0, cout_pad - cout)))                        # added to the f32 acc
    return w2, b2


def mean_pool_conv(x_nchw, w2, b2, *, k_size, n_output):
    """Pallas implementation of MeanPoolConv.forward.  Input/output are NCHW.
    w2/b2 come from prepare_mean_pool_conv_params (hoisted out of the forward)."""
    # PyTorch uses padding=(k-1)//2, which is 'same' only for odd kernels.
    assert k_size % 2 == 1, "MeanPoolConv Pallas kernel assumes odd k_size"
    N, Cin, H, W = x_nchw.shape
    assert H % 2 == 0 and W % 2 == 0, "2x2 mean-pool kernel assumes even H and W"
    Hp, Wp = H // 2, W // 2
    p = (k_size - 1) // 2
    C4 = 4 * Cin
    K = k_size * k_size * C4
    M = N * Hp * Wp
    Cout_pad = w2.shape[1]
    assert w2.shape[0] == K

    # Layout glue (tiny here): a single NCHW -> space-to-depth-NHWC transpose plus the
    # 'same' zero pad, so the kernel sees a lane-contiguous (.., 4*Cin) grid and never
    # touches a padded border itself.
    # TODO(synk): accept NHWC at the op boundary in production so this transpose (and the
    # output one) disappear.
    x_s2d = jnp.transpose(x_nchw.reshape(N, Cin, Hp, 2, Wp, 2),
                          (0, 2, 4, 3, 5, 1)).reshape(N, Hp, Wp, C4)    # c4 = (dy,dx,ci)
    x_pad = jnp.pad(x_s2d, ((0, 0), (p, p), (p, p), (0, 0)))

    kernel = functools.partial(meanpool_conv_kernel, k=k_size, n=N, hp=Hp, wp=Wp, c4=C4)

    act_bytes = jnp.dtype(x_pad.dtype).itemsize
    cost = pl.CostEstimate(
        flops=2 * M * K * Cout_pad,
        transcendentals=0,
        bytes_accessed=(x_pad.size * act_bytes
                        + w2.size * jnp.dtype(w2.dtype).itemsize
                        + b2.size * 4
                        + M * Cout_pad * act_bytes),
    )

    out = pl.pallas_call(
        kernel,
        out_shape=jax.ShapeDtypeStruct((M, Cout_pad), x_nchw.dtype),
        grid=(1,),   # whole (tiny) problem resident in VMEM; batch folded into matmul M
        # TODO(synk): at production sizes tile M over a "parallel" grid axis (>=512-row
        # tiles, halo rows on Hp), keep w2/b2 resident via index_map (0, 0) and use
        # pl.Buffered(2-3) on the activation spec; size the tile against v7x's 64 MiB
        # VMEM via vmem_limit_bytes.
        in_specs=[
            pl.BlockSpec((N, Hp + 2 * p, Wp + 2 * p, C4), lambda i: (0, 0, 0, 0)),
            pl.BlockSpec((K, Cout_pad), lambda i: (0, 0)),
            pl.BlockSpec((1, Cout_pad), lambda i: (0, 0)),
        ],
        out_specs=pl.BlockSpec((M, Cout_pad), lambda i: (0, 0)),
        scratch_shapes=[
            pltpu.VMEM((N, Hp, Wp, K), x_pad.dtype),   # im2col LHS, built in place
        ],
        compiler_params=pltpu.CompilerParams(dimension_semantics=("arbitrary",)),
        cost_estimate=cost,
    )(x_pad, w2, b2)

    out = out[:, :n_output].reshape(N, Hp, Wp, n_output)
    return jnp.transpose(out, (0, 3, 1, 2))                             # back to NCHW


def mean_pool_conv_reference(x, w, b):
    """Pure-JAX reference matching the PyTorch module."""
    pooled = (x[:, :, ::2, ::2] + x[:, :, 1::2, ::2]
              + x[:, :, ::2, 1::2] + x[:, :, 1::2, 1::2]) / 4.0
    out = lax.conv_general_dilated(
        pooled, w, window_strides=(1, 1), padding="SAME",
        dimension_numbers=("NCHW", "OIHW", "NCHW"))
    return out + b.reshape(1, -1, 1, 1)


if __name__ == "__main__":
    # Shapes consistent with MeanPoolConv(n_input=4, n_output=8, k_size=3).
    N, Cin, Cout, H, W, K = 2, 4, 8, 16, 16, 3

    key = jax.random.PRNGKey(0)
    kx, kw, kb = jax.random.split(key, 3)

    x = jax.random.normal(kx, (N, Cin, H, W), dtype=jnp.float32)

    # Deterministic parameter init (PyTorch-style uniform bound = 1/sqrt(fan_in)).
    fan_in = Cin * K * K
    bound = 1.0 / (fan_in ** 0.5)
    w = jax.random.uniform(kw, (Cout, Cin, K, K), jnp.float32, -bound, bound)
    b = jax.random.uniform(kb, (Cout,), jnp.float32, -bound, bound)

    # Parameter prep hoisted out of the forward (done once per model).
    w2, b2 = prepare_mean_pool_conv_params(w, b, k_size=K)

    out = mean_pool_conv(x, w2, b2, k_size=K, n_output=Cout)
    out = jax.block_until_ready(out)

    ref = mean_pool_conv_reference(x, w, b)
    assert out.shape == ref.shape == (N, Cout, H // 2, W // 2)
    assert jnp.allclose(out, ref, rtol=1e-4, atol=1e-5), "mismatch vs. reference"

    print("KERNEL_OK")
</pallas_src>

<mosaic_0001>
module attributes {stable_mosaic.version = 11 : i64} {
  func.func @meanpool_conv_kernel(%arg0: i32, %arg1: memref<2x10x10x16xf32, #tpu.memory_space<vmem>>, %arg2: memref<144x128xf32, #tpu.memory_space<vmem>>, %arg3: memref<1x128xf32, #tpu.memory_space<vmem>>, %arg4: memref<128x128xf32, #tpu.memory_space<vmem>>, %arg5: memref<2x8x8x144xf32, #tpu.memory_space<vmem>>) attributes {dimension_semantics = [#tpu.dimension_semantics<arbitrary>], iteration_bounds = array<i64: 1>, scalar_prefetch = 0 : i64, scratch_operands = 1 : i64, tpu.core_type = #tpu.core_type<tc>, window_params = [{pipeline_mode = #tpu.pipeline_mode<synchronous>, transform_indices = @transform_0, window_bounds = array<i64: 2, 10, 10, 16>}, {pipeline_mode = #tpu.pipeline_mode<synchronous>, transform_indices = @transform_1, window_bounds = array<i64: 144, 128>}, {pipeline_mode = #tpu.pipeline_mode<synchronous>, transform_indices = @transform_2, window_bounds = array<i64: 1, 128>}, {pipeline_mode = #tpu.pipeline_mode<synchronous>, transform_indices = @transform_3, window_bounds = array<i64: 128, 128>}]} {
    %c0 = arith.constant 0 : index
    %c0_0 = arith.constant 0 : index
    %c0_1 = arith.constant 0 : index
    %c0_2 = arith.constant 0 : index
    %0 = vector.load %arg1[%c0, %c0_0, %c0_1, %c0_2] : memref<2x10x10x16xf32, #tpu.memory_space<vmem>>, vector<2x8x8x16xf32>
    %c0_3 = arith.constant 0 : index
    %c0_4 = arith.constant 0 : index
    %c0_5 = arith.constant 0 : index
    %c0_6 = arith.constant 0 : index
    %1 = vector.load %arg5[%c0_3, %c0_4, %c0_5, %c0_6] : memref<2x8x8x144xf32, #tpu.memory_space<vmem>>, vector<2x8x8x16xf32>
    tpu.vector_store %arg5[%c0_3, %c0_4, %c0_5, %c0_6], %0 {strides = array<i32>} : memref<2x8x8x144xf32, #tpu.memory_space<vmem>>, vector<2x8x8x16xf32>,
    %c0_7 = arith.constant 0 : index
    %c0_8 = arith.constant 0 : index
    %c1 = arith.constant 1 : index
    %c0_9 = arith.constant 0 : index
    %2 = vector.load %arg1[%c0_7, %c0_8, %c1, %c0_9] : memref<2x10x10x16xf32, #tpu.memory_space<vmem>>, vector<2x8x8x16xf32>
    %c0_10 = arith.constant 0 : index
    %c0_11 = arith.constant 0 : index
    %c0_12 = arith.constant 0 : index
    %c16 = arith.constant 16 : index
    %3 = vector.load %arg5[%c0_10, %c0_11, %c0_12, %c16] : memref<2x8x8x144xf32, #tpu.memory_space<vmem>>, vector<2x8x8x16xf32>
    tpu.vector_store %arg5[%c0_10, %c0_11, %c0_12, %c16], %2 {strides = array<i32>} : memref<2x8x8x144xf32, #tpu.memory_space<vmem>>, vector<2x8x8x16xf32>,
    %c0_13 = arith.constant 0 : index
    %c0_14 = arith.constant 0 : index
    %c2 = arith.constant 2 : index
    %c0_15 = arith.constant 0 : index
    %4 = vector.load %arg1[%c0_13, %c0_14, %c2, %c0_15] : memref<2x10x10x16xf32, #tpu.memory_space<vmem>>, vector<2x8x8x16xf32>
    %c0_16 = arith.constant 0 : index
    %c0_17 = arith.constant 0 : index
    %c0_18 = arith.constant 0 : index
    %c32 = arith.constant 32 : index
    %5 = vector.load %arg5[%c0_16, %c0_17, %c0_18, %c32] : memref<2x8x8x144xf32, #tpu.memory_space<vmem>>, vector<2x8x8x16xf32>
    tpu.vector_store %arg5[%c0_16, %c0_17, %c0_18, %c32], %4 {strides = array<i32>} : memref<2x8x8x144xf32, #tpu.memory_space<vmem>>, vector<2x8x8x16xf32>,
    %c0_19 = arith.constant 0 : index
    %c1_20 = arith.constant 1 : index
    %c0_21 = arith.constant 0 : index
    %c0_22 = arith.constant 0 : index
    %6 = vector.load %arg1[%c0_19, %c1_20, %c0_21, %c0_22] : memref<2x10x10x16xf32, #tpu.memory_space<vmem>>, vector<2x8x8x16xf32>
    %c0_23 = arith.constant 0 : index
    %c0_24 = arith.constant 0 : index
    %c0_25 = arith.constant 0 : index
    %c48 = arith.constant 48 : index
    %7 = vector.load %arg5[%c0_23, %c0_24, %c0_25, %c48] : memref<2x8x8x144xf32, #tpu.memory_space<vmem>>, vector<2x8x8x16xf32>
    tpu.vector_store %arg5[%c0_23, %c0_24, %c0_25, %c48], %6 {strides = array<i32>} : memref<2x8x8x144xf32, #tpu.memory_space<vmem>>, vector<2x8x8x16xf32>,
    %c0_26 = arith.constant 0 : index
    %c1_27 = arith.constant 1 : index
    %c1_28 = arith.constant 1 : index
    %c0_29 = arith.constant 0 : index
    %8 = vector.load %arg1[%c0_26, %c1_27, %c1_28, %c0_29] : memref<2x10x10x16xf32, #tpu.memory_space<vmem>>, vector<2x8x8x16xf32>
    %c0_30 = arith.constant 0 : index
    %c0_31 = arith.constant 0 : index
    %c0_32 = arith.constant 0 : index
    %c64 = arith.constant 64 : index
    %9 = vector.load %arg5[%c0_30, %c0_31, %c0_32, %c64] : memref<2x8x8x144xf32, #tpu.memory_space<vmem>>, vector<2x8x8x16xf32>
    tpu.vector_store %arg5[%c0_30, %c0_31, %c0_32, %c64], %8 {strides = array<i32>} : memref<2x8x8x144xf32, #tpu.memory_space<vmem>>, vector<2x8x8x16xf32>,
    %c0_33 = arith.constant 0 : index
    %c1_34 = arith.constant 1 : index
    %c2_35 = arith.constant 2 : index
    %c0_36 = arith.constant 0 : index
    %10 = vector.load %arg1[%c0_33, %c1_34, %c2_35, %c0_36] : memref<2x10x10x16xf32, #tpu.memory_space<vmem>>, vector<2x8x8x16xf32>
    %c0_37 = arith.constant 0 : index
    %c0_38 = arith.constant 0 : index
    %c0_39 = arith.constant 0 : index
    %c80 = arith.constant 80 : index
    %11 = vector.load %arg5[%c0_37, %c0_38, %c0_39, %c80] : memref<2x8x8x144xf32, #tpu.memory_space<vmem>>, vector<2x8x8x16xf32>
    tpu.vector_store %arg5[%c0_37, %c0_38, %c0_39, %c80], %10 {strides = array<i32>} : memref<2x8x8x144xf32, #tpu.memory_space<vmem>>, vector<2x8x8x16xf32>,
    %c0_40 = arith.constant 0 : index
    %c2_41 = arith.constant 2 : index
    %c0_42 = arith.constant 0 : index
    %c0_43 = arith.constant 0 : index
    %12 = vector.load %arg1[%c0_40, %c2_41, %c0_42, %c0_43] : memref<2x10x10x16xf32, #tpu.memory_space<vmem>>, vector<2x8x8x16xf32>
    %c0_44 = arith.constant 0 : index
    %c0_45 = arith.constant 0 : index
    %c0_46 = arith.constant 0 : index
    %c96 = arith.constant 96 : index
    %13 = vector.load %arg5[%c0_44, %c0_45, %c0_46, %c96] : memref<2x8x8x144xf32, #tpu.memory_space<vmem>>, vector<2x8x8x16xf32>
    tpu.vector_store %arg5[%c0_44, %c0_45, %c0_46, %c96], %12 {strides = array<i32>} : memref<2x8x8x144xf32, #tpu.memory_space<vmem>>, vector<2x8x8x16xf32>,
    %c0_47 = arith.constant 0 : index
    %c2_48 = arith.constant 2 : index
    %c1_49 = arith.constant 1 : index
    %c0_50 = arith.constant 0 : index
    %14 = vector.load %arg1[%c0_47, %c2_48, %c1_49, %c0_50] : memref<2x10x10x16xf32, #tpu.memory_space<vmem>>, vector<2x8x8x16xf32>
    %c0_51 = arith.constant 0 : index
    %c0_52 = arith.constant 0 : index
    %c0_53 = arith.constant 0 : index
    %c112 = arith.constant 112 : index
    %15 = vector.load %arg5[%c0_51, %c0_52, %c0_53, %c112] : memref<2x8x8x144xf32, #tpu.memory_space<vmem>>, vector<2x8x8x16xf32>
    tpu.vector_store %arg5[%c0_51, %c0_52, %c0_53, %c112], %14 {strides = array<i32>} : memref<2x8x8x144xf32, #tpu.memory_space<vmem>>, vector<2x8x8x16xf32>,
    %c0_54 = arith.constant 0 : index
    %c2_55 = arith.constant 2 : index
    %c2_56 = arith.constant 2 : index
    %c0_57 = arith.constant 0 : index
    %16 = vector.load %arg1[%c0_54, %c2_55, %c2_56, %c0_57] : memref<2x10x10x16xf32, #tpu.memory_space<vmem>>, vector<2x8x8x16xf32>
    %c0_58 = arith.constant 0 : index
    %c0_59 = arith.constant 0 : index
    %c0_60 = arith.constant 0 : index
    %c128 = arith.constant 128 : index
    %17 = vector.load %arg5[%c0_58, %c0_59, %c0_60, %c128] : memref<2x8x8x144xf32, #tpu.memory_space<vmem>>, vector<2x8x8x16xf32>
    tpu.vector_store %arg5[%c0_58, %c0_59, %c0_60, %c128], %16 {strides = array<i32>} : memref<2x8x8x144xf32, #tpu.memory_space<vmem>>, vector<2x8x8x16xf32>,
    %c0_61 = arith.constant 0 : index
    %c0_62 = arith.constant 0 : index
    %c0_63 = arith.constant 0 : index
    %c0_64 = arith.constant 0 : index
    %18 = vector.load %arg5[%c0_61, %c0_62, %c0_63, %c0_64] : memref<2x8x8x144xf32, #tpu.memory_space<vmem>>, vector<2x8x8x144xf32>
    %19 = vector.shape_cast %18 : vector<2x8x8x144xf32> to vector<128x144xf32>
    %c0_65 = arith.constant 0 : index
    %c0_66 = arith.constant 0 : index
    %20 = vector.load %arg2[%c0_65, %c0_66] : memref<144x128xf32, #tpu.memory_space<vmem>>, vector<144x128xf32>
    %cst = arith.constant dense<0.000000e+00> : vector<128x128xf32>
    %21 = tpu.matmul %19, %20, %cst {dimension_numbers = #tpu.dot_dimension_numbers<[1], [0], [0], [1], [0, 0, 1, 1], [], []>} : vector<128x144xf32>, vector<144x128xf32>, vector<128x128xf32> -> vector<128x128xf32>
    %c0_67 = arith.constant 0 : index
    %c0_68 = arith.constant 0 : index
    %22 = vector.load %arg3[%c0_67, %c0_68] : memref<1x128xf32, #tpu.memory_space<vmem>>, vector<1x128xf32>
    %23 = vector.broadcast %22 : vector<1x128xf32> to vector<128x128xf32>
    %24 = arith.addf %21, %23 : vector<128x128xf32>
    %c0_69 = arith.constant 0 : index
    %c0_70 = arith.constant 0 : index
    %25 = vector.load %arg4[%c0_69, %c0_70] : memref<128x128xf32, #tpu.memory_space<vmem>>, vector<128x128xf32>
    tpu.vector_store %arg4[%c0_69, %c0_70], %24 {strides = array<i32>} : memref<128x128xf32, #tpu.memory_space<vmem>>, vector<128x128xf32>,
    return
  }
  func.func @transform_0(%arg0: i32) -> (i32, i32, i32, i32) {
    %c0_i32 = arith.constant 0 : i32
    %c0_i32_0 = arith.constant 0 : i32
    %c0_i32_1 = arith.constant 0 : i32
    %c0_i32_2 = arith.constant 0 : i32
    %c0_i32_3 = arith.constant 0 : i32
    return %c0_i32, %c0_i32_0, %c0_i32_1, %c0_i32_2 : i32, i32, i32, i32
  }
  func.func @transform_1(%arg0: i32) -> (i32, i32) {
    %c0_i32 = arith.constant 0 : i32
    %c0_i32_0 = arith.constant 0 : i32
    %c0_i32_1 = arith.constant 0 : i32
    return %c0_i32, %c0_i32_0 : i32, i32
  }
  func.func @transform_2(%arg0: i32) -> (i32, i32) {
    %c0_i32 = arith.constant 0 : i32
    %c0_i32_0 = arith.constant 0 : i32
    %c0_i32_1 = arith.constant 0 : i32
    return %c0_i32, %c0_i32_0 : i32, i32
  }
  func.func @transform_3(%arg0: i32) -> (i32, i32) {
    %c0_i32 = arith.constant 0 : i32
    %c0_i32_0 = arith.constant 0 : i32
    %c0_i32_1 = arith.constant 0 : i32
    return %c0_i32, %c0_i32_0 : i32, i32
  }
}

</mosaic_0001>

<bundles_post_ra>
// kernel: tpu_custom_call.1
= control target key start
LH: loop header
LB: loop body
LE: loop exit
PB: predicated region body
PF: predicated region fallthrough
CT: control target
= control target key end

     0   :  { %s1236_s16 = smov 32   ;;  %s1237_s17 = smov 16   ;;  %vm31_vm0 = vcmask 130048   ;;  %v1238_v8 = vmov 0.0|0.0   ;;  %s1952_s0 = inlined_call_operand.vmem [shape: f32[2,10,10,16], index: 0, kind: input, shape index: {}]   ;;  %s1953_s1 = inlined_call_operand.vmem [shape: f32[144,128], index: 1, kind: input, shape index: {}]   ;;  %s1954_s2 = inlined_call_operand.vmem [shape: f32[1,128], index: 2, kind: input, shape index: {}]   ;;  %s1955_s3 = inlined_call_operand.hbm [shape: f32[128,128], index: 3, kind: output, shape index: {}]  }
   0x1   :  { %v145_v0 = vld [vmem:[%s1952_s0 + $0x2] sm:$0xff]  ;;  %v1051_v2 = vld [vmem:[%s1952_s0 + $0xb0] sm:$0xff]  ;;  %1156 = vmatprep.subr.bf16.mxu0 %v1238_v8  ;;  %1183 = vmatprep.subr.bf16.mxu1 %v1238_v8  ;;  %s1239_s23 = smov 48   ;;  %s1240_s15 = smov 64   ;;  %v796_v29 = vld [vmem:[%s1953_s1 + $0x18] sm:$0xff] }
   0x2   :  { %v48_v1 = vld [vmem:[%s1952_s0 + $0x1] sm:$0xff]  ;;  %177 = vrot.lane.b32.xlu1 %v145_v0, %s1236_s16  ;;  %v1043_v5 = vld [vmem:[%s1952_s0 + $0x10] sm:$0xff]  ;;  %41 = vst.msk [vmem:[#allocation2 + $0x90] sm:$0xff] %vm31_vm0, %v1051_v2 }
   0x3   :  { %80 = vrot.lane.b32.xlu0 %v48_v1, %s1237_s17  ;;  %v153_v3 = vld [vmem:[%s1952_s0 + $0xa2] sm:$0xff]  ;;  %33 = vst.msk [vmem:[#allocation2 + $0x10] sm:$0xff] %vm31_vm0, %v1043_v5  ;;  %v1320_v11 = vld [vmem:[%s1952_s0 + $0xd0] sm:$0xff] }
   0x4   :  { %v56_v4 = vld [vmem:[%s1952_s0 + $0xa1] sm:$0xff]  ;;  %v1325_v12 = vld [vmem:[%s1952_s0 + $0x30] sm:$0xff]  ;;  %43 = vst.msk [vmem:[#allocation2 + $0xb0] sm:$0xff] %vm31_vm0, %v1320_v11 }
   0x5   :  { %v1291_v6 = vld [vmem:[%s1952_s0 + $0xc0] sm:$0xff]  ;;  %v1334_v13 = vld [vmem:[%s1952_s0 + $0xd2] sm:$0xff]  ;;  %35 = vst.msk [vmem:[#allocation2 + $0x30] sm:$0xff] %vm31_vm0, %v1325_v12  ;;  %v794_v26 = vld [vmem:[%s1953_s1 + $0x8] sm:$0xff] }
   0x6   :  { %v1297_v7 = vld [vmem:[%s1952_s0 + $0x20] sm:$0xff]  ;;  %42 = vst.msk [vmem:[#allocation2 + $0xa0] sm:$0xff] %vm31_vm0, %v1291_v6  ;;  %193 = vrot.lane.b32.xlu1 %v153_v3, %s1236_s16  ;;  %v1339_v14 = vld [vmem:[%s1952_s0 + $0x32] sm:$0xff]  ;;  %754 = vst.msk [vmem:[#allocation2 + $0x98] sm:$0xff] %vm31_vm0, %v1334_v13 }
   0x7   :  { %96 = vrot.lane.b32.xlu0 %v56_v4, %s1237_s17  ;;  %v1308_v9 = vld [vmem:[%s1952_s0 + $0xc2] sm:$0xff]  ;;  %34 = vst.msk [vmem:[#allocation2 + $0x20] sm:$0xff] %vm31_vm0, %v1297_v7  ;;  %v1067_v15 = vld [vmem:[%s1952_s0 + $0xb1] sm:$0xff]  ;;  %746 = vst.msk [vmem:[#allocation2 + $0x18] sm:$0xff] %vm31_vm0, %v1339_v14 }
   0x8   :  { %v1313_v10 = vld [vmem:[%s1952_s0 + $0x22] sm:$0xff]  ;;  %753 = vst.msk [vmem:[#allocation2 + $0x88] sm:$0xff] %vm31_vm0, %v1308_v9  ;;  %v1059_v18 = vld [vmem:[%s1952_s0 + $0x11] sm:$0xff] }
   0x9   :  { %745 = vst.msk [vmem:[#allocation2 + $0x8] sm:$0xff] %vm31_vm0, %v1313_v10  ;;  %v1351_v16 = vld [vmem:[%s1952_s0 + $0xe0] sm:$0xff]  ;;  %v1384_v21 = vld [vmem:[%s1952_s0 + $0xf0] sm:$0xff]  ;;  %v798_v34 = vld [vmem:[%s1953_s1 + $0x28] sm:$0xff] }
   0xa   :  { %v1356_v17 = vld [vmem:[%s1952_s0 + $0x40] sm:$0xff]  ;;  %291 = vrot.lane.b32.xlu1 %v1051_v2, %s1239_s23  ;;  %44 = vst.msk [vmem:[#allocation2 + $0xc0] sm:$0xff] %vm31_vm0, %v1351_v16  ;;  %v1389_v22 = vld [vmem:[%s1952_s0 + $0x50] sm:$0xff]  ;;  %45 = vst.msk [vmem:[#allocation2 + $0xd0] sm:$0xff] %vm31_vm0, %v1384_v21 }
   0xb   :  { %275 = vrot.lane.b32.xlu0 %v1043_v5, %s1239_s23  ;;  %v1370_v19 = vld [vmem:[%s1952_s0 + $0xe2] sm:$0xff]  ;;  %36 = vst.msk [vmem:[#allocation2 + $0x40] sm:$0xff] %vm31_vm0, %v1356_v17  ;;  %37 = vst.msk [vmem:[#allocation2 + $0x50] sm:$0xff] %vm31_vm0, %v1389_v22  ;;  %v795_v28 = vld [vmem:[%s1953_s1 + $0x10] sm:$0xff] }
   0xc   :  { %v1379_v20 = vld [vmem:[%s1952_s0 + $0x42] sm:$0xff]  ;;  %755 = vst.msk [vmem:[#allocation2 + $0xa8] sm:$0xff] %vm31_vm0, %v1370_v19  ;;  %v1424_v30 = vld [vmem:[%s1952_s0 + $0xf2] sm:$0xff]  ;;  %v1160_v31 = vpack.c.bf16 %v796_v29, %v795_v28 }
   0xd   :  { %v15_v23 = vld [vmem:[%s1952_s0] sm:$0xff]  ;;  %747 = vst.msk [vmem:[#allocation2 + $0x28] sm:$0xff] %vm31_vm0, %v1379_v20  ;;  %v1429_v32 = vld [vmem:[%s1952_s0 + $0x52] sm:$0xff]  ;;  %756 = vst.msk [vmem:[#allocation2 + $0xb8] sm:$0xff] %vm31_vm0, %v1424_v30 }
   0xe   :  { %v23_v24 = vld [vmem:[%s1952_s0 + $0xa0] sm:$0xff]  ;;  %32 = vst.msk [vmem:[#allocation2] sm:$0xff] %vm31_vm0, %v15_v23  ;;  %388 = vrot.lane.b32.xlu1 %v1067_v15, %s1240_s15  ;;  %748 = vst.msk [vmem:[#allocation2 + $0x38] sm:$0xff] %vm31_vm0, %v1429_v32  ;;  %v1083_v37 = vld [vmem:[%s1952_s0 + $0xb2] sm:$0xff] }
   0xf   :  { %40 = vst.msk [vmem:[#allocation2 + $0x80] sm:$0xff] %vm31_vm0, %v23_v24  ;;  %v793_v25 = vld [vmem:[%s1953_s1] sm:$0xff]  ;;  %372 = vrot.lane.b32.xlu0 %v1059_v18, %s1240_s15  ;;  %v1075_v38 = vld [vmem:[%s1952_s0 + $0x12] sm:$0xff] }
  0x10   :  { %v1157_v27 = vpack.c.bf16 %v794_v26, %v793_v25  ;;  %v797_v33 = vld [vmem:[%s1953_s1 + $0x20] sm:$0xff] }
  0x11   :  { %v1444_v35 = vld [vmem:[%s1952_s0 + $0x100] sm:$0xff]  ;;  %v1163_v39 = vpack.c.bf16 %v798_v34, %v797_v33 }
  0x12   :  { %1158 = vmatpush1.bf16.msra.mxu0 %v1157_v27  ;;  %1192 = vmatpush1.bf16.msra.mxu1 %v1157_v27  ;;  %v1453_v36 = vld [vmem:[%s1952_s0 + $0x60] sm:$0xff]  ;;  %46 = vst.msk [vmem:[#allocation2 + $0xe0] sm:$0xff] %vm31_vm0, %v1444_v35 }
  0x13   :  { %1159 = vmatprep.subr.bf16.mxu0 %v1238_v8  ;;  %1184 = vmatprep.subr.bf16.mxu1 %v1238_v8  ;;  %38 = vst.msk [vmem:[#allocation2 + $0x60] sm:$0xff] %vm31_vm0, %v1453_v36 }
  0x14   :  { %98 = vrot.lane.b32.xlu1 %v1067_v15, %s1237_s17  ;;  %82 = vrot.lane.b32.xlu0 %v1059_v18, %s1237_s17 }
  0x16   :  { %1161 = vmatpush1.bf16.msra.mxu0 %v1160_v31  ;;  %1193 = vmatpush1.bf16.msra.mxu1 %v1160_v31 }
  0x17   :  { %8 = vsyncpa [#allocation4], 0  ;;  %1162 = vmatprep.subr.bf16.mxu0 %v1238_v8  ;;  %1185 = vmatprep.subr.bf16.mxu1 %v1238_v8  ;;  %v799_v40 = vld [vmem:[%s1953_s1 + $0x30] sm:$0xff]  ;;  %v800_v41 = vld [vmem:[%s1953_s1 + $0x38] sm:$0xff]  ;;  %s1241_s19 = smov 80   ;;  %s1242_s29 = smov 96  }
  0x18   :  { %485 = vrot.lane.b32.xlu1 %v1083_v37, %s1241_s19  ;;  %469 = vrot.lane.b32.xlu0 %v1075_v38, %s1241_s19  ;;  %v1166_v42 = vpack.c.bf16 %v800_v41, %v799_v40  ;;  %v801_v43 = vld [vmem:[%s1953_s1 + $0x40] sm:$0xff]  ;;  %v802_v44 = vld [vmem:[%s1953_s1 + $0x48] sm:$0xff]  ;;  %s1243_s24 = smov 112   ;;  %vm128_vm1 = vcmask 261248   ;;  %vm225_vm2 = vcmask 392448   ;;  %vm323_vm3 = vcmask 523648  }
  0x19   :  { %v1169_v45 = vpack.c.bf16 %v802_v44, %v801_v43  ;;  %v803_v46 = vld [vmem:[%s1953_s1 + $0x50] sm:$0xff]  ;;  %v804_v47 = vld [vmem:[%s1953_s1 + $0x58] sm:$0xff]  ;;  %v805_v49 = vld [vmem:[%s1953_s1 + $0x60] sm:$0xff]  ;;  %vm420_vm4 = vcmask 654848   ;;  %vm517_vm5 = vcmask 786048   ;;  %vm615_vm6 = vcmask 917248  }
  0x1a   :  { %1164 = vmatpush1.bf16.msra.mxu0 %v1163_v39  ;;  %1194 = vmatpush1.bf16.msra.mxu1 %v1163_v39  ;;  %v1172_v48 = vpack.c.bf16 %v804_v47, %v803_v46  ;;  %v762_v50 = vld [vmem:[#allocation2 + $0x8] sm:$0xff]  ;;  %v807_v58 = vld [vmem:[%s1953_s1 + $0x70] sm:$0xff]  ;;  %v808_v59 = vld [vmem:[%s1953_s1 + $0x78] sm:$0xff]  ;;  %vm712_vm7 = vcmask 1048448  }
  0x1b   :  { %1165 = vmatprep.subr.bf16.mxu0 %v1238_v8  ;;  %1186 = vmatprep.subr.bf16.mxu1 %v1238_v8  ;;  %v778_v51 = vld [vmem:[#allocation2 + $0x88] sm:$0xff]  ;;  %v1178_v60 = vpack.c.bf16 %v808_v59, %v807_v58  ;;  %v809_v61 = vld [vmem:[%s1953_s1 + $0x80] sm:$0xff]  ;;  %v1552_v63 = vld [vmem:[%s1952_s0 + $0x110] sm:$0xff] }
  0x1c   :  { %195 = vrot.lane.b32.xlu1 %v1083_v37, %s1236_s16  ;;  %179 = vrot.lane.b32.xlu0 %v1075_v38, %s1236_s16  ;;  %v806_v52 = vld [vmem:[%s1953_s1 + $0x68] sm:$0xff]  ;;  %v1557_v0 = vld [vmem:[%s1952_s0 + $0x70] sm:$0xff]  ;;  %47 = vst.msk [vmem:[#allocation2 + $0xf0] sm:$0xff] %vm31_vm0, %v1552_v63  ;;  %v780_v41 = vld [vmem:[#allocation2 + $0x98] sm:$0xff] }
  0x1d   :  { %v1508_v53 = vld [vmem:[%s1952_s0 + $0x102] sm:$0xff]  ;;  %1140 = vmatprep.mubr.msk.f32.mxu0 %vm31_vm0, %v762_v50  ;;  %1148 = vmatprep.mubr.msk.f32.mxu1 %vm31_vm0, %v778_v51  ;;  %v1175_v57 = vpack.c.bf16 %v806_v52, %v805_v49  ;;  %39 = vst.msk [vmem:[#allocation2 + $0x70] sm:$0xff] %vm31_vm0, %v1557_v0  ;;  %v1584_v2 = vld [vmem:[%s1952_s0 + $0x112] sm:$0xff] }
  0x1e   :  { %1167 = vmatpush1.bf16.msra.mxu0 %v1166_v42  ;;  %1195 = vmatpush1.bf16.msra.mxu1 %v1166_v42  ;;  %v1513_v54 = vld [vmem:[%s1952_s0 + $0x62] sm:$0xff]  ;;  %757 = vst.msk [vmem:[#allocation2 + $0xc8] sm:$0xff] %vm31_vm0, %v1508_v53  ;;  %v1589_v3 = vld [vmem:[%s1952_s0 + $0x72] sm:$0xff]  ;;  %758 = vst.msk [vmem:[#allocation2 + $0xd8] sm:$0xff] %vm31_vm0, %v1584_v2 }
  0x1f   :  { %1168 = vmatprep.subr.bf16.mxu0 %v1238_v8  ;;  %1187 = vmatprep.subr.bf16.mxu1 %v1238_v8  ;;  %749 = vst.msk [vmem:[#allocation2 + $0x48] sm:$0xff] %vm31_vm0, %v1513_v54  ;;  %v1115_v55 = vld [vmem:[%s1952_s0 + $0xc1] sm:$0xff]  ;;  %750 = vst.msk [vmem:[#allocation2 + $0x58] sm:$0xff] %vm31_vm0, %v1589_v3  ;;  %v1116_v4 = vld [vmem:[%s1952_s0 + $0xd1] sm:$0xff] }
  0x20   :  { %583 = vrot.lane.b32.xlu1 %v1291_v6, %s1242_s29  ;;  %567 = vrot.lane.b32.xlu0 %v1297_v7, %s1242_s29  ;;  %v1107_v56 = vld [vmem:[%s1952_s0 + $0x21] sm:$0xff]  ;;  %v1108_v5 = vld [vmem:[%s1952_s0 + $0x31] sm:$0xff] }
  0x21   :  { %v810_v62 = vld [vmem:[%s1953_s1 + $0x88] sm:$0xff]  ;;  %v1112_v49 = vld [vmem:[%s1952_s0 + $0x71] sm:$0xff] }
  0x22   :  { %1170 = vmatpush1.bf16.msra.mxu0 %v1169_v45  ;;  %1196 = vmatpush1.bf16.msra.mxu1 %v1169_v45  ;;  %v1181_v1 = vpack.c.bf16 %v810_v62, %v809_v61  ;;  %v1119_v28 = vld [vmem:[%s1952_s0 + $0x101] sm:$0xff] }
  0x23   :  { %1171 = vmatprep.subr.bf16.mxu0 %v1238_v8  ;;  %1188 = vmatprep.subr.bf16.mxu1 %v1238_v8  ;;  %v1111_v29 = vld [vmem:[%s1952_s0 + $0x61] sm:$0xff] }
  0x24   :  { %293 = vrot.lane.b32.xlu1 %v1291_v6, %s1239_s23  ;;  %277 = vrot.lane.b32.xlu0 %v1297_v7, %s1239_s23  ;;  %v1622_v6 = vld [vmem:[%s1952_s0 + $0x122] sm:$0xff] }
  0x25   :  { %v1627_v7 = vld [vmem:[%s1952_s0 + $0x82] sm:$0xff]  ;;  %759 = vst.msk [vmem:[#allocation2 + $0xe8] sm:$0xff] %vm31_vm0, %v1622_v6 }
  0x26   :  { %1173 = vmatpush1.bf16.msra.mxu0 %v1172_v48  ;;  %1197 = vmatpush1.bf16.msra.mxu1 %v1172_v48  ;;  %751 = vst.msk [vmem:[#allocation2 + $0x68] sm:$0xff] %vm31_vm0, %v1627_v7  ;;  %v1120_v48 = vld [vmem:[%s1952_s0 + $0x111] sm:$0xff]  ;;  %v782_v61 = vld [vmem:[#allocation2 + $0xa8] sm:$0xff] }
  0x27   :  { %1174 = vmatprep.subr.bf16.mxu0 %v1238_v8  ;;  %1189 = vmatprep.subr.bf16.mxu1 %v1238_v8 }
  0x28   :  { %680 = vrot.lane.b32.xlu1 %v1115_v55, %s1243_s24  ;;  %664 = vrot.lane.b32.xlu0 %v1107_v56, %s1243_s24 }
  0x2a   :  { %1176 = vmatpush1.bf16.msra.mxu0 %v1175_v57  ;;  %1198 = vmatpush1.bf16.msra.mxu1 %v1175_v57 }
  0x2b   :  { %1177 = vmatprep.subr.bf16.mxu0 %v1238_v8  ;;  %1190 = vmatprep.subr.bf16.mxu1 %v1238_v8 }
  0x2c   :  { %390 = vrot.lane.b32.xlu1 %v1115_v55, %s1240_s15  ;;  %374 = vrot.lane.b32.xlu0 %v1107_v56, %s1240_s15 }
  0x2e   :  { %1179 = vmatpush1.bf16.msra.mxu0 %v1178_v60  ;;  %1199 = vmatpush1.bf16.msra.mxu1 %v1178_v60 }
  0x2f   :  { %1180 = vmatprep.subr.bf16.mxu0 %v1238_v8  ;;  %1191 = vmatprep.subr.bf16.mxu1 %v1238_v8  ;;  %v1117_v8 = vld [vmem:[%s1952_s0 + $0xe1] sm:$0xff] }
  0x30   :  { %100 = vrot.lane.b32.xlu1 %v1115_v55, %s1237_s17  ;;  %84 = vrot.lane.b32.xlu0 %v1107_v56, %s1237_s17  ;;  %v766_v56 = vld [vmem:[#allocation2 + $0x28] sm:$0xff] }
  0x32   :  { %1182 = vmatpush1.bf16.msra.mxu0 %v1181_v1  ;;  %1200 = vmatpush1.bf16.msra.mxu1 %v1181_v1  ;;  %v1097_v1 = vld [vmem:[%s1952_s0 + $0x80] sm:$0xff] }
  0x34   :  { %487 = vrot.lane.b32.xlu1 %v1308_v9, %s1241_s19  ;;  %471 = vrot.lane.b32.xlu0 %v1313_v10, %s1241_s19 }
  0x38   :  { %197 = vrot.lane.b32.xlu1 %v1308_v9, %s1236_s16  ;;  %181 = vrot.lane.b32.xlu0 %v1313_v10, %s1236_s16  ;;  %v1109_v9 = vld [vmem:[%s1952_s0 + $0x41] sm:$0xff] }
  0x3c   :  { %585 = vrot.lane.b32.xlu1 %v1320_v11, %s1242_s29  ;;  %569 = vrot.lane.b32.xlu0 %v1325_v12, %s1242_s29 }
  0x40   :  { %295 = vrot.lane.b32.xlu1 %v1320_v11, %s1239_s23  ;;  %279 = vrot.lane.b32.xlu0 %v1325_v12, %s1239_s23  ;;  %v1118_v12 = vld [vmem:[%s1952_s0 + $0xf1] sm:$0xff] }
  0x44   :  { %682 = vrot.lane.b32.xlu1 %v1116_v4, %s1243_s24  ;;  %666 = vrot.lane.b32.xlu0 %v1108_v5, %s1243_s24 }
  0x48   :  { %392 = vrot.lane.b32.xlu1 %v1116_v4, %s1240_s15  ;;  %376 = vrot.lane.b32.xlu0 %v1108_v5, %s1240_s15 }
  0x4c   :  { %102 = vrot.lane.b32.xlu1 %v1116_v4, %s1237_s17  ;;  %86 = vrot.lane.b32.xlu0 %v1108_v5, %s1237_s17 }
  0x50   :  { %489 = vrot.lane.b32.xlu1 %v1334_v13, %s1241_s19  ;;  %473 = vrot.lane.b32.xlu0 %v1339_v14, %s1241_s19 }
  0x54   :  { %199 = vrot.lane.b32.xlu1 %v1334_v13, %s1236_s16  ;;  %183 = vrot.lane.b32.xlu0 %v1339_v14, %s1236_s16  ;;  %v1110_v13 = vld [vmem:[%s1952_s0 + $0x51] sm:$0xff] }
  0x58   :  { %587 = vrot.lane.b32.xlu1 %v1351_v16, %s1242_s29  ;;  %571 = vrot.lane.b32.xlu0 %v1356_v17, %s1242_s29 }
  0x5c   :  { %297 = vrot.lane.b32.xlu1 %v1351_v16, %s1239_s23  ;;  %281 = vrot.lane.b32.xlu0 %v1356_v17, %s1239_s23 }
  0x60   :  { %684 = vrot.lane.b32.xlu1 %v1117_v8, %s1243_s24  ;;  %668 = vrot.lane.b32.xlu0 %v1109_v9, %s1243_s24 }
  0x64   :  { %394 = vrot.lane.b32.xlu1 %v1117_v8, %s1240_s15  ;;  %378 = vrot.lane.b32.xlu0 %v1109_v9, %s1240_s15 }
  0x68   :  { %104 = vrot.lane.b32.xlu1 %v1117_v8, %s1237_s17  ;;  %88 = vrot.lane.b32.xlu0 %v1109_v9, %s1237_s17  ;;  %v1121_v8 = vld [vmem:[%s1952_s0 + $0x121] sm:$0xff] }
  0x69   :  { %v1113_v9 = vld [vmem:[%s1952_s0 + $0x81] sm:$0xff] }
  0x6c   :  { %491 = vrot.lane.b32.xlu1 %v1370_v19, %s1241_s19  ;;  %475 = vrot.lane.b32.xlu0 %v1379_v20, %s1241_s19 }
  0x70   :  { %201 = vrot.lane.b32.xlu1 %v1370_v19, %s1236_s16  ;;  %185 = vrot.lane.b32.xlu0 %v1379_v20, %s1236_s16 }
  0x74   :  { %589 = vrot.lane.b32.xlu1 %v1384_v21, %s1242_s29  ;;  %573 = vrot.lane.b32.xlu0 %v1389_v22, %s1242_s29  ;;  %v178_v10 = vpop.permute.xlu1 %177 }
  0x75   :  { %v81_v11 = vpop.permute.xlu0 %80 }
  0x76   :  { %129 = vst.msk [vmem:[#allocation2] sm:$0xff] %vm128_vm1, %v81_v11 }
  0x77   :  { %226 = vst.msk [vmem:[#allocation2] sm:$0xff] %vm225_vm2, %v178_v10 }
  0x78   :  { %299 = vrot.lane.b32.xlu1 %v1384_v21, %s1239_s23  ;;  %283 = vrot.lane.b32.xlu0 %v1389_v22, %s1239_s23  ;;  %v194_v14 = vpop.permute.xlu1 %193 }
  0x79   :  { %v97_v15 = vpop.permute.xlu0 %96 }
  0x7a   :  { %137 = vst.msk [vmem:[#allocation2 + $0x80] sm:$0xff] %vm128_vm1, %v97_v15 }
  0x7b   :  { %234 = vst.msk [vmem:[#allocation2 + $0x80] sm:$0xff] %vm225_vm2, %v194_v14 }
  0x7c   :  { %686 = vrot.lane.b32.xlu1 %v1118_v12, %s1243_s24  ;;  %670 = vrot.lane.b32.xlu0 %v1110_v13, %s1243_s24  ;;  %v292_v16 = vpop.permute.xlu1 %291 }
  0x7d   :  { %v276_v17 = vpop.permute.xlu0 %275  ;;  %332 = vst.msk [vmem:[#allocation2 + $0x80] sm:$0xff] %vm323_vm3, %v292_v16 }
  0x7e   :  { %324 = vst.msk [vmem:[#allocation2] sm:$0xff] %vm323_vm3, %v276_v17 }
  0x80   :  { %396 = vrot.lane.b32.xlu1 %v1118_v12, %s1240_s15  ;;  %380 = vrot.lane.b32.xlu0 %v1110_v13, %s1240_s15  ;;  %v389_v18 = vpop.permute.xlu1 %388 }
  0x81   :  { %v373_v19 = vpop.permute.xlu0 %372  ;;  %429 = vst.msk [vmem:[#allocation2 + $0x80] sm:$0xff] %vm420_vm4, %v389_v18  ;;  %v1106_v18 = vld [vmem:[%s1952_s0 + $0x130] sm:$0xff] }
  0x82   :  { %421 = vst.msk [vmem:[#allocation2] sm:$0xff] %vm420_vm4, %v373_v19  ;;  %v1098_v19 = vld [vmem:[%s1952_s0 + $0x90] sm:$0xff] }
  0x84   :  { %106 = vrot.lane.b32.xlu1 %v1118_v12, %s1237_s17  ;;  %90 = vrot.lane.b32.xlu0 %v1110_v13, %s1237_s17  ;;  %v1130_v12 = vld [vmem:[%s1952_s0 + $0x92] sm:$0xff] }
  0x85   :  { %v1138_v13 = vld [vmem:[%s1952_s0 + $0x132] sm:$0xff]  ;;  %752 = vst.msk [vmem:[#allocation2 + $0x78] sm:$0xff] %vm31_vm0, %v1130_v12  ;;  %v774_v12 = vld [vmem:[#allocation2 + $0x68] sm:$0xff] }
  0x86   :  { %v99_v20 = vpop.permute.xlu1 %98  ;;  %v83_v21 = vpop.permute.xlu0 %82  ;;  %760 = vst.msk [vmem:[#allocation2 + $0xf8] sm:$0xff] %vm31_vm0, %v1138_v13  ;;  %v790_v13 = vld [vmem:[#allocation2 + $0xe8] sm:$0xff] }
  0x87   :  { %138 = vst.msk [vmem:[#allocation2 + $0x90] sm:$0xff] %vm128_vm1, %v99_v20  ;;  %130 = vst.msk [vmem:[#allocation2 + $0x10] sm:$0xff] %vm128_vm1, %v83_v21  ;;  %v768_v20 = vld [vmem:[#allocation2 + $0x38] sm:$0xff] }
  0x88   :  { %493 = vrot.lane.b32.xlu1 %v1424_v30, %s1241_s19  ;;  %477 = vrot.lane.b32.xlu0 %v1429_v32, %s1241_s19 }
  0x8a   :  { %v486_v22 = vpop.permute.xlu1 %485  ;;  %v470_v23 = vpop.permute.xlu0 %469 }
  0x8b   :  { %526 = vst.msk [vmem:[#allocation2 + $0x80] sm:$0xff] %vm517_vm5, %v486_v22  ;;  %518 = vst.msk [vmem:[#allocation2] sm:$0xff] %vm517_vm5, %v470_v23 }
  0x8c   :  { %203 = vrot.lane.b32.xlu1 %v1424_v30, %s1236_s16  ;;  %187 = vrot.lane.b32.xlu0 %v1429_v32, %s1236_s16 }
  0x8e   :  { %v196_v24 = vpop.permute.xlu1 %195  ;;  %v180_v25 = vpop.permute.xlu0 %179 }
  0x8f   :  { %235 = vst.msk [vmem:[#allocation2 + $0x90] sm:$0xff] %vm225_vm2, %v196_v24  ;;  %227 = vst.msk [vmem:[#allocation2 + $0x10] sm:$0xff] %vm225_vm2, %v180_v25  ;;  %v784_v25 = vld [vmem:[#allocation2 + $0xb8] sm:$0xff] }
  0x90   :  { %591 = vrot.lane.b32.xlu1 %v1444_v35, %s1242_s29  ;;  %575 = vrot.lane.b32.xlu0 %v1453_v36, %s1242_s29 }
  0x92   :  { %v584_v26 = vpop.permute.xlu1 %583  ;;  %v568_v27 = vpop.permute.xlu0 %567 }
  0x93   :  { %624 = vst.msk [vmem:[#allocation2 + $0x80] sm:$0xff] %vm615_vm6, %v584_v26  ;;  %616 = vst.msk [vmem:[#allocation2] sm:$0xff] %vm615_vm6, %v568_v27 }
  0x94   :  { %301 = vrot.lane.b32.xlu1 %v1444_v35, %s1239_s23  ;;  %285 = vrot.lane.b32.xlu0 %v1453_v36, %s1239_s23  ;;  %v764_v36 = vld [vmem:[#allocation2 + $0x18] sm:$0xff] }
  0x96   :  { %v294_v30 = vpop.permute.xlu1 %293  ;;  %v278_v31 = vpop.permute.xlu0 %277 }
  0x97   :  { %333 = vst.msk [vmem:[#allocation2 + $0x90] sm:$0xff] %vm323_vm3, %v294_v30  ;;  %325 = vst.msk [vmem:[#allocation2 + $0x10] sm:$0xff] %vm323_vm3, %v278_v31 }
  0x98   :  { %688 = vrot.lane.b32.xlu1 %v1119_v28, %s1243_s24  ;;  %672 = vrot.lane.b32.xlu0 %v1111_v29, %s1243_s24 }
  0x9a   :  { %v681_v32 = vpop.permute.xlu1 %680  ;;  %v665_v33 = vpop.permute.xlu0 %664 }
  0x9b   :  { %721 = vst.msk [vmem:[#allocation2 + $0x80] sm:$0xff] %vm712_vm7, %v681_v32  ;;  %713 = vst.msk [vmem:[#allocation2] sm:$0xff] %vm712_vm7, %v665_v33 }
  0x9c   :  { %398 = vrot.lane.b32.xlu1 %v1119_v28, %s1240_s15  ;;  %382 = vrot.lane.b32.xlu0 %v1111_v29, %s1240_s15 }
  0x9e   :  { %v391_v34 = vpop.permute.xlu1 %390  ;;  %v375_v35 = vpop.permute.xlu0 %374 }
  0x9f   :  { %430 = vst.msk [vmem:[#allocation2 + $0x90] sm:$0xff] %vm420_vm4, %v391_v34  ;;  %422 = vst.msk [vmem:[#allocation2 + $0x10] sm:$0xff] %vm420_vm4, %v375_v35 }
  0xa0   :  { %108 = vrot.lane.b32.xlu1 %v1119_v28, %s1237_s17  ;;  %92 = vrot.lane.b32.xlu0 %v1111_v29, %s1237_s17 }
  0xa2   :  { %v101_v37 = vpop.permute.xlu1 %100  ;;  %v85_v38 = vpop.permute.xlu0 %84  ;;  %v761_v39 = vld [vmem:[#allocation2] sm:$0xff] }
  0xa3   :  { %v777_v40 = vld [vmem:[#allocation2 + $0x80] sm:$0xff]  ;;  %139 = vst.msk [vmem:[#allocation2 + $0xa0] sm:$0xff] %vm128_vm1, %v101_v37  ;;  %131 = vst.msk [vmem:[#allocation2 + $0x20] sm:$0xff] %vm128_vm1, %v85_v38  ;;  %931 = vmatmul.mubr.f32.vlgmr.msra.gmra.mrb[0].mxu0 %v761_v39  ;;  %v770_v38 = vld [vmem:[#allocation2 + $0x48] sm:$0xff] }
  0xa4   :  { %971 = vmatmul.mubr.f32.vlgmr.msra.gmra.mrb[0].mxu1 %v777_v40  ;;  %495 = vrot.lane.b32.xlu1 %v1508_v53, %s1241_s19  ;;  %v786_v39 = vld [vmem:[#allocation2 + $0xc8] sm:$0xff] }
  0xa5   :  { %479 = vrot.lane.b32.xlu0 %v1513_v54, %s1241_s19  ;;  %1141 = vmatprep.mubr.msk.f32.mxu0 %vm31_vm0, %v764_v36 }
  0xa6   :  { %1149 = vmatprep.mubr.msk.f32.mxu1 %vm31_vm0, %v780_v41  ;;  %v488_v42 = vpop.permute.xlu1 %487  ;;  %v472_v43 = vpop.permute.xlu0 %471 }
  0xa7   :  { %527 = vst.msk [vmem:[#allocation2 + $0x90] sm:$0xff] %vm517_vm5, %v488_v42  ;;  %519 = vst.msk [vmem:[#allocation2 + $0x10] sm:$0xff] %vm517_vm5, %v472_v43 }
  0xa8   :  { %205 = vrot.lane.b32.xlu1 %v1508_v53, %s1236_s16 }
  0xa9   :  { %189 = vrot.lane.b32.xlu0 %v1513_v54, %s1236_s16 }
  0xaa   :  { %v198_v44 = vpop.permute.xlu1 %197  ;;  %v182_v45 = vpop.permute.xlu0 %181 }
  0xab   :  { %236 = vst.msk [vmem:[#allocation2 + $0xa0] sm:$0xff] %vm225_vm2, %v198_v44  ;;  %228 = vst.msk [vmem:[#allocation2 + $0x20] sm:$0xff] %vm225_vm2, %v182_v45 }
  0xac   :  { %593 = vrot.lane.b32.xlu1 %v1552_v63, %s1242_s29 }
  0xad   :  { %577 = vrot.lane.b32.xlu0 %v1557_v0, %s1242_s29 }
  0xae   :  { %v586_v46 = vpop.permute.xlu1 %585  ;;  %v570_v47 = vpop.permute.xlu0 %569 }
  0xaf   :  { %625 = vst.msk [vmem:[#allocation2 + $0x90] sm:$0xff] %vm615_vm6, %v586_v46  ;;  %617 = vst.msk [vmem:[#allocation2 + $0x10] sm:$0xff] %vm615_vm6, %v570_v47 }
  0xb0   :  { %303 = vrot.lane.b32.xlu1 %v1552_v63, %s1239_s23 }
  0xb1   :  { %287 = vrot.lane.b32.xlu0 %v1557_v0, %s1239_s23  ;;  %v1105_v0 = vld [vmem:[%s1952_s0 + $0x120] sm:$0xff] }
  0xb2   :  { %v296_v50 = vpop.permute.xlu1 %295  ;;  %v280_v51 = vpop.permute.xlu0 %279 }
  0xb3   :  { %334 = vst.msk [vmem:[#allocation2 + $0xa0] sm:$0xff] %vm323_vm3, %v296_v50  ;;  %326 = vst.msk [vmem:[#allocation2 + $0x20] sm:$0xff] %vm323_vm3, %v280_v51 }
  0xb4   :  { %690 = vrot.lane.b32.xlu1 %v1120_v48, %s1243_s24 }
  0xb5   :  { %674 = vrot.lane.b32.xlu0 %v1112_v49, %s1243_s24 }
  0xb6   :  { %v683_v52 = vpop.permute.xlu1 %682  ;;  %v667_v53 = vpop.permute.xlu0 %666 }
  0xb7   :  { %722 = vst.msk [vmem:[#allocation2 + $0x90] sm:$0xff] %vm712_vm7, %v683_v52  ;;  %714 = vst.msk [vmem:[#allocation2 + $0x10] sm:$0xff] %vm712_vm7, %v667_v53 }
  0xb8   :  { %400 = vrot.lane.b32.xlu1 %v1120_v48, %s1240_s15 }
  0xb9   :  { %384 = vrot.lane.b32.xlu0 %v1112_v49, %s1240_s15 }
  0xba   :  { %v393_v54 = vpop.permute.xlu1 %392  ;;  %v377_v55 = vpop.permute.xlu0 %376 }
  0xbb   :  { %431 = vst.msk [vmem:[#allocation2 + $0xa0] sm:$0xff] %vm420_vm4, %v393_v54  ;;  %423 = vst.msk [vmem:[#allocation2 + $0x20] sm:$0xff] %vm420_vm4, %v377_v55 }
  0xbc   :  { %110 = vrot.lane.b32.xlu1 %v1120_v48, %s1237_s17 }
  0xbd   :  { %94 = vrot.lane.b32.xlu0 %v1112_v49, %s1237_s17 }
  0xbe   :  { %v103_v57 = vpop.permute.xlu1 %102  ;;  %v87_v58 = vpop.permute.xlu0 %86  ;;  %v763_v59 = vld [vmem:[#allocation2 + $0x10] sm:$0xff] }
  0xbf   :  { %v779_v60 = vld [vmem:[#allocation2 + $0x90] sm:$0xff]  ;;  %140 = vst.msk [vmem:[#allocation2 + $0xb0] sm:$0xff] %vm128_vm1, %v103_v57  ;;  %132 = vst.msk [vmem:[#allocation2 + $0x30] sm:$0xff] %vm128_vm1, %v87_v58  ;;  %936 = vmatmul.mubr.f32.gmra.mrb[2].mxu0 %v763_v59  ;;  %v788_v57 = vld [vmem:[#allocation2 + $0xd8] sm:$0xff] }
  0xc0   :  { %976 = vmatmul.mubr.f32.gmra.mrb[2].mxu1 %v779_v60  ;;  %497 = vrot.lane.b32.xlu1 %v1584_v2, %s1241_s19 }
  0xc1   :  { %481 = vrot.lane.b32.xlu0 %v1589_v3, %s1241_s19  ;;  %1142 = vmatprep.mubr.msk.f32.mxu0 %vm31_vm0, %v766_v56  ;;  %v772_v56 = vld [vmem:[#allocation2 + $0x58] sm:$0xff] }
  0xc2   :  { %1150 = vmatprep.mubr.msk.f32.mxu1 %vm31_vm0, %v782_v61  ;;  %v490_v62 = vpop.permute.xlu1 %489  ;;  %v474_v63 = vpop.permute.xlu0 %473 }
  0xc3   :  { %528 = vst.msk [vmem:[#allocation2 + $0xa0] sm:$0xff] %vm517_vm5, %v490_v62  ;;  %520 = vst.msk [vmem:[#allocation2 + $0x20] sm:$0xff] %vm517_vm5, %v474_v63 }
  0xc4   :  { %207 = vrot.lane.b32.xlu1 %v1584_v2, %s1236_s16 }
  0xc5   :  { %191 = vrot.lane.b32.xlu0 %v1589_v3, %s1236_s16 }
  0xc6   :  { %v200_v4 = vpop.permute.xlu1 %199  ;;  %v184_v5 = vpop.permute.xlu0 %183 }
  0xc7   :  { %237 = vst.msk [vmem:[#allocation2 + $0xb0] sm:$0xff] %vm225_vm2, %v200_v4  ;;  %229 = vst.msk [vmem:[#allocation2 + $0x30] sm:$0xff] %vm225_vm2, %v184_v5 }
  0xc8   :  { %595 = vrot.lane.b32.xlu1 %v1105_v0, %s1242_s29 }
  0xc9   :  { %579 = vrot.lane.b32.xlu0 %v1097_v1, %s1242_s29 }
  0xca   :  { %v588_v2 = vpop.permute.xlu1 %587  ;;  %v572_v3 = vpop.permute.xlu0 %571 }
  0xcb   :  { %626 = vst.msk [vmem:[#allocation2 + $0xa0] sm:$0xff] %vm615_vm6, %v588_v2  ;;  %618 = vst.msk [vmem:[#allocation2 + $0x20] sm:$0xff] %vm615_vm6, %v572_v3 }
  0xcc   :  { %305 = vrot.lane.b32.xlu1 %v1105_v0, %s1239_s23 }
  0xcd   :  { %289 = vrot.lane.b32.xlu0 %v1097_v1, %s1239_s23 }
  0xce   :  { %v298_v10 = vpop.permute.xlu1 %297  ;;  %v282_v11 = vpop.permute.xlu0 %281 }
  0xcf   :  { %335 = vst.msk [vmem:[#allocation2 + $0xb0] sm:$0xff] %vm323_vm3, %v298_v10  ;;  %327 = vst.msk [vmem:[#allocation2 + $0x30] sm:$0xff] %vm323_vm3, %v282_v11 }
  0xd0   :  { %692 = vrot.lane.b32.xlu1 %v1121_v8, %s1243_s24 }
  0xd1   :  { %676 = vrot.lane.b32.xlu0 %v1113_v9, %s1243_s24 }
  0xd2   :  { %v685_v14 = vpop.permute.xlu1 %684  ;;  %v669_v15 = vpop.permute.xlu0 %668 }
  0xd3   :  { %723 = vst.msk [vmem:[#allocation2 + $0xa0] sm:$0xff] %vm712_vm7, %v685_v14  ;;  %715 = vst.msk [vmem:[#allocation2 + $0x20] sm:$0xff] %vm712_vm7, %v669_v15 }
  0xd4   :  { %402 = vrot.lane.b32.xlu1 %v1121_v8, %s1240_s15 }
  0xd5   :  { %386 = vrot.lane.b32.xlu0 %v1113_v9, %s1240_s15 }
  0xd6   :  { %v395_v16 = vpop.permute.xlu1 %394  ;;  %v379_v17 = vpop.permute.xlu0 %378 }
  0xd7   :  { %432 = vst.msk [vmem:[#allocation2 + $0xb0] sm:$0xff] %vm420_vm4, %v395_v16  ;;  %424 = vst.msk [vmem:[#allocation2 + $0x30] sm:$0xff] %vm420_vm4, %v379_v17 }
  0xd8   :  { %499 = vrot.lane.b32.xlu1 %v1622_v6, %s1241_s19  ;;  %v1122_v6 = vld [vmem:[%s1952_s0 + $0x131] sm:$0xff] }
  0xd9   :  { %483 = vrot.lane.b32.xlu0 %v1627_v7, %s1241_s19  ;;  %v1114_v7 = vld [vmem:[%s1952_s0 + $0x91] sm:$0xff] }
  0xda   :  { %v105_v21 = vpop.permute.xlu1 %104  ;;  %v89_v22 = vpop.permute.xlu0 %88  ;;  %v765_v23 = vld [vmem:[#allocation2 + $0x20] sm:$0xff] }
  0xdb   :  { %v781_v24 = vld [vmem:[#allocation2 + $0xa0] sm:$0xff]  ;;  %141 = vst.msk [vmem:[#allocation2 + $0xc0] sm:$0xff] %vm128_vm1, %v105_v21  ;;  %133 = vst.msk [vmem:[#allocation2 + $0x40] sm:$0xff] %vm128_vm1, %v89_v22  ;;  %941 = vmatmul.mubr.f32.gmra.mrb[4].mxu0 %v765_v23 }
  0xdc   :  { %981 = vmatmul.mubr.f32.gmra.mrb[4].mxu1 %v781_v24  ;;  %597 = vrot.lane.b32.xlu1 %v1106_v18, %s1242_s29 }
  0xdd   :  { %581 = vrot.lane.b32.xlu0 %v1098_v19, %s1242_s29  ;;  %1143 = vmatprep.mubr.msk.f32.mxu0 %vm31_vm0, %v768_v20 }
  0xde   :  { %1151 = vmatprep.mubr.msk.f32.mxu1 %vm31_vm0, %v784_v25  ;;  %v492_v26 = vpop.permute.xlu1 %491  ;;  %v476_v27 = vpop.permute.xlu0 %475 }
  0xdf   :  { %529 = vst.msk [vmem:[#allocation2 + $0xb0] sm:$0xff] %vm517_vm5, %v492_v26  ;;  %521 = vst.msk [vmem:[#allocation2 + $0x30] sm:$0xff] %vm517_vm5, %v476_v27 }
  0xe0   :  { %694 = vrot.lane.b32.xlu1 %v1122_v6, %s1243_s24 }
  0xe1   :  { %678 = vrot.lane.b32.xlu0 %v1114_v7, %s1243_s24 }
  0xe2   :  { %v202_v28 = vpop.permute.xlu1 %201  ;;  %v186_v29 = vpop.permute.xlu0 %185 }
  0xe3   :  { %238 = vst.msk [vmem:[#allocation2 + $0xc0] sm:$0xff] %vm225_vm2, %v202_v28  ;;  %230 = vst.msk [vmem:[#allocation2 + $0x40] sm:$0xff] %vm225_vm2, %v186_v29  ;;  %v776_v28 = vld [vmem:[#allocation2 + $0x78] sm:$0xff] }
  0xe4   :  { %v792_v29 = vld [vmem:[#allocation2 + $0xf8] sm:$0xff] }
  0xe6   :  { %v590_v30 = vpop.permute.xlu1 %589  ;;  %v574_v31 = vpop.permute.xlu0 %573 }
  0xe7   :  { %627 = vst.msk [vmem:[#allocation2 + $0xb0] sm:$0xff] %vm615_vm6, %v590_v30  ;;  %619 = vst.msk [vmem:[#allocation2 + $0x30] sm:$0xff] %vm615_vm6, %v574_v31 }
  0xea   :  { %v300_v32 = vpop.permute.xlu1 %299  ;;  %v284_v33 = vpop.permute.xlu0 %283 }
  0xeb   :  { %336 = vst.msk [vmem:[#allocation2 + $0xc0] sm:$0xff] %vm323_vm3, %v300_v32  ;;  %328 = vst.msk [vmem:[#allocation2 + $0x40] sm:$0xff] %vm323_vm3, %v284_v33 }
  0xee   :  { %v687_v34 = vpop.permute.xlu1 %686  ;;  %v671_v35 = vpop.permute.xlu0 %670 }
  0xef   :  { %724 = vst.msk [vmem:[#allocation2 + $0xb0] sm:$0xff] %vm712_vm7, %v687_v34  ;;  %716 = vst.msk [vmem:[#allocation2 + $0x30] sm:$0xff] %vm712_vm7, %v671_v35 }
  0xf2   :  { %v397_v36 = vpop.permute.xlu1 %396  ;;  %v381_v37 = vpop.permute.xlu0 %380 }
  0xf3   :  { %433 = vst.msk [vmem:[#allocation2 + $0xc0] sm:$0xff] %vm420_vm4, %v397_v36  ;;  %425 = vst.msk [vmem:[#allocation2 + $0x40] sm:$0xff] %vm420_vm4, %v381_v37 }
  0xf6   :  { %v107_v40 = vpop.permute.xlu1 %106  ;;  %v91_v41 = vpop.permute.xlu0 %90  ;;  %v767_v42 = vld [vmem:[#allocation2 + $0x30] sm:$0xff] }
  0xf7   :  { %v783_v43 = vld [vmem:[#allocation2 + $0xb0] sm:$0xff]  ;;  %142 = vst.msk [vmem:[#allocation2 + $0xd0] sm:$0xff] %vm128_vm1, %v107_v40  ;;  %134 = vst.msk [vmem:[#allocation2 + $0x50] sm:$0xff] %vm128_vm1, %v91_v41  ;;  %946 = vmatmul.mubr.f32.gmra.mrb[6].mxu0 %v767_v42  ;;  %v1922_v40 = vld [vmem:[%s1954_s2] ss:$0 sm:$0xff]  ;;  %s1244_s2 = smov [#allocation3]  }
  0xf8   :  { %986 = vmatmul.mubr.f32.gmra.mrb[6].mxu1 %v783_v43  ;;  %1144 = vmatprep.mubr.msk.f32.mxu0 %vm31_vm0, %v770_v38  ;;  %s1032_s24 = sshll.u32 %s1244_s2, 4  ;;  %s1033_s24 = int_to_ptr.vmem [resolvable:$true] %s1032_s24 }
  0xf9   :  { %1152 = vmatprep.mubr.msk.f32.mxu1 %vm31_vm0, %v786_v39  ;;  %s1212_s7 = scalar_lea.vmem %s1033_s24, 2048  ;;  %p1217_p1 = scmp.lt.s32.totalorder %s1033_s24, %s1033_s24 }
  0xfa   :  { %v494_v44 = vpop.permute.xlu1 %493  ;;  %v478_v45 = vpop.permute.xlu0 %477  ;;  %p1213_p0 = scmp.ne.s32.totalorder %s1033_s24, %s1212_s7  ;;  %p1218_p2 = scmp.lt.s32.totalorder %s1212_s7, %s1212_s7 }
  0xfb   :  { %530 = vst.msk [vmem:[#allocation2 + $0xc0] sm:$0xff] %vm517_vm5, %v494_v44  ;;  %522 = vst.msk [vmem:[#allocation2 + $0x40] sm:$0xff] %vm517_vm5, %v478_v45 }
  0xfc   :  { %p1219_p3 = por %p1218_p2, %p1217_p1 }
  0xfe   :  { %v204_v46 = vpop.permute.xlu1 %203  ;;  %v188_v47 = vpop.permute.xlu0 %187  ;;  %p1220_p4 = pnand %p1219_p3, %p1213_p0 }
  0xff   :  { %239 = vst.msk [vmem:[#allocation2 + $0xd0] sm:$0xff] %vm225_vm2, %v204_v46  ;;  %231 = vst.msk [vmem:[#allocation2 + $0x50] sm:$0xff] %vm225_vm2, %v188_v47 }
 0x102   :  { %v592_v48 = vpop.permute.xlu1 %591  ;;  %v576_v49 = vpop.permute.xlu0 %575 }
 0x103   :  { %628 = vst.msk [vmem:[#allocation2 + $0xc0] sm:$0xff] %vm615_vm6, %v592_v48  ;;  %620 = vst.msk [vmem:[#allocation2 + $0x40] sm:$0xff] %vm615_vm6, %v576_v49 }
 0x106   :  { %v302_v50 = vpop.permute.xlu1 %301  ;;  %v286_v51 = vpop.permute.xlu0 %285 }
 0x107   :  { %337 = vst.msk [vmem:[#allocation2 + $0xd0] sm:$0xff] %vm323_vm3, %v302_v50  ;;  %329 = vst.msk [vmem:[#allocation2 + $0x50] sm:$0xff] %vm323_vm3, %v286_v51 }
 0x10a   :  { %v689_v52 = vpop.permute.xlu1 %688  ;;  %v673_v53 = vpop.permute.xlu0 %672 }
 0x10b   :  { %725 = vst.msk [vmem:[#allocation2 + $0xc0] sm:$0xff] %vm712_vm7, %v689_v52  ;;  %717 = vst.msk [vmem:[#allocation2 + $0x40] sm:$0xff] %vm712_vm7, %v673_v53 }
 0x10e   :  { %v399_v54 = vpop.permute.xlu1 %398  ;;  %v383_v55 = vpop.permute.xlu0 %382 }
 0x10f   :  { %434 = vst.msk [vmem:[#allocation2 + $0xd0] sm:$0xff] %vm420_vm4, %v399_v54  ;;  %426 = vst.msk [vmem:[#allocation2 + $0x50] sm:$0xff] %vm420_vm4, %v383_v55 }
 0x112   :  { %v109_v58 = vpop.permute.xlu1 %108  ;;  %v93_v59 = vpop.permute.xlu0 %92  ;;  %v769_v60 = vld [vmem:[#allocation2 + $0x40] sm:$0xff] }
 0x113   :  { %v785_v61 = vld [vmem:[#allocation2 + $0xc0] sm:$0xff]  ;;  %143 = vst.msk [vmem:[#allocation2 + $0xe0] sm:$0xff] %vm128_vm1, %v109_v58  ;;  %135 = vst.msk [vmem:[#allocation2 + $0x60] sm:$0xff] %vm128_vm1, %v93_v59  ;;  %951 = vmatmul.mubr.f32.gmra.mrb[8].mxu0 %v769_v60 }
 0x114   :  { %991 = vmatmul.mubr.f32.gmra.mrb[8].mxu1 %v785_v61  ;;  %1145 = vmatprep.mubr.msk.f32.mxu0 %vm31_vm0, %v772_v56 }
 0x115   :  { %1153 = vmatprep.mubr.msk.f32.mxu1 %vm31_vm0, %v788_v57 }
 0x116   :  { %v496_v62 = vpop.permute.xlu1 %495 }
 0x117   :  { %v480_v63 = vpop.permute.xlu0 %479  ;;  %531 = vst.msk [vmem:[#allocation2 + $0xd0] sm:$0xff] %vm517_vm5, %v496_v62 }
 0x118   :  { %523 = vst.msk [vmem:[#allocation2 + $0x50] sm:$0xff] %vm517_vm5, %v480_v63 }
 0x11a   :  { %v206_v0 = vpop.permute.xlu1 %205 }
 0x11b   :  { %v190_v1 = vpop.permute.xlu0 %189  ;;  %240 = vst.msk [vmem:[#allocation2 + $0xe0] sm:$0xff] %vm225_vm2, %v206_v0 }
 0x11c   :  { %232 = vst.msk [vmem:[#allocation2 + $0x60] sm:$0xff] %vm225_vm2, %v190_v1 }
 0x11e   :  { %v594_v4 = vpop.permute.xlu1 %593 }
 0x11f   :  { %v578_v5 = vpop.permute.xlu0 %577  ;;  %629 = vst.msk [vmem:[#allocation2 + $0xd0] sm:$0xff] %vm615_vm6, %v594_v4 }
 0x120   :  { %621 = vst.msk [vmem:[#allocation2 + $0x50] sm:$0xff] %vm615_vm6, %v578_v5 }
 0x122   :  { %v304_v2 = vpop.permute.xlu1 %303 }
 0x123   :  { %v288_v3 = vpop.permute.xlu0 %287  ;;  %338 = vst.msk [vmem:[#allocation2 + $0xe0] sm:$0xff] %vm323_vm3, %v304_v2 }
 0x124   :  { %330 = vst.msk [vmem:[#allocation2 + $0x60] sm:$0xff] %vm323_vm3, %v288_v3 }
 0x126   :  { %v691_v8 = vpop.permute.xlu1 %690 }
 0x127   :  { %v675_v9 = vpop.permute.xlu0 %674  ;;  %726 = vst.msk [vmem:[#allocation2 + $0xd0] sm:$0xff] %vm712_vm7, %v691_v8 }
 0x128   :  { %718 = vst.msk [vmem:[#allocation2 + $0x50] sm:$0xff] %vm712_vm7, %v675_v9 }
 0x12a   :  { %v401_v10 = vpop.permute.xlu1 %400 }
 0x12b   :  { %v385_v11 = vpop.permute.xlu0 %384  ;;  %435 = vst.msk [vmem:[#allocation2 + $0xe0] sm:$0xff] %vm420_vm4, %v401_v10 }
 0x12c   :  { %427 = vst.msk [vmem:[#allocation2 + $0x60] sm:$0xff] %vm420_vm4, %v385_v11 }
 0x12e   :  { %v111_v14 = vpop.permute.xlu1 %110  ;;  %v787_v17 = vld [vmem:[#allocation2 + $0xd0] sm:$0xff] }
 0x12f   :  { %v95_v15 = vpop.permute.xlu0 %94  ;;  %v771_v16 = vld [vmem:[#allocation2 + $0x50] sm:$0xff]  ;;  %144 = vst.msk [vmem:[#allocation2 + $0xf0] sm:$0xff] %vm128_vm1, %v111_v14  ;;  %996 = vmatmul.mubr.f32.gmra.mrb[10].mxu1 %v787_v17 }
 0x130   :  { %136 = vst.msk [vmem:[#allocation2 + $0x70] sm:$0xff] %vm128_vm1, %v95_v15  ;;  %956 = vmatmul.mubr.f32.gmra.mrb[10].mxu0 %v771_v16  ;;  %1154 = vmatprep.mubr.msk.f32.mxu1 %vm31_vm0, %v790_v13 }
 0x131   :  { %1146 = vmatprep.mubr.msk.f32.mxu0 %vm31_vm0, %v774_v12 }
 0x132   :  { %v498_v18 = vpop.permute.xlu1 %497 }
 0x133   :  { %v482_v19 = vpop.permute.xlu0 %481  ;;  %532 = vst.msk [vmem:[#allocation2 + $0xe0] sm:$0xff] %vm517_vm5, %v498_v18 }
 0x134   :  { %524 = vst.msk [vmem:[#allocation2 + $0x60] sm:$0xff] %vm517_vm5, %v482_v19 }
 0x136   :  { %v208_v20 = vpop.permute.xlu1 %207 }
 0x137   :  { %v192_v21 = vpop.permute.xlu0 %191  ;;  %241 = vst.msk [vmem:[#allocation2 + $0xf0] sm:$0xff] %vm225_vm2, %v208_v20 }
 0x138   :  { %233 = vst.msk [vmem:[#allocation2 + $0x70] sm:$0xff] %vm225_vm2, %v192_v21 }
 0x13a   :  { %v596_v22 = vpop.permute.xlu1 %595 }
 0x13b   :  { %v580_v23 = vpop.permute.xlu0 %579  ;;  %630 = vst.msk [vmem:[#allocation2 + $0xe0] sm:$0xff] %vm615_vm6, %v596_v22 }
 0x13c   :  { %622 = vst.msk [vmem:[#allocation2 + $0x60] sm:$0xff] %vm615_vm6, %v580_v23 }
 0x13e   :  { %v306_v24 = vpop.permute.xlu1 %305 }
 0x13f   :  { %v290_v25 = vpop.permute.xlu0 %289  ;;  %339 = vst.msk [vmem:[#allocation2 + $0xf0] sm:$0xff] %vm323_vm3, %v306_v24 }
 0x140   :  { %331 = vst.msk [vmem:[#allocation2 + $0x70] sm:$0xff] %vm323_vm3, %v290_v25 }
 0x142   :  { %v693_v6 = vpop.permute.xlu1 %692 }
 0x143   :  { %v677_v7 = vpop.permute.xlu0 %676  ;;  %727 = vst.msk [vmem:[#allocation2 + $0xe0] sm:$0xff] %vm712_vm7, %v693_v6 }
 0x144   :  { %719 = vst.msk [vmem:[#allocation2 + $0x60] sm:$0xff] %vm712_vm7, %v677_v7 }
 0x146   :  { %v403_v26 = vpop.permute.xlu1 %402 }
 0x147   :  { %v387_v27 = vpop.permute.xlu0 %386  ;;  %436 = vst.msk [vmem:[#allocation2 + $0xf0] sm:$0xff] %vm420_vm4, %v403_v26 }
 0x148   :  { %428 = vst.msk [vmem:[#allocation2 + $0x70] sm:$0xff] %vm420_vm4, %v387_v27 }
 0x14a   :  { %v500_v30 = vpop.permute.xlu1 %499  ;;  %v789_v33 = vld [vmem:[#allocation2 + $0xe0] sm:$0xff] }
 0x14b   :  { %v484_v31 = vpop.permute.xlu0 %483  ;;  %v773_v32 = vld [vmem:[#allocation2 + $0x60] sm:$0xff]  ;;  %533 = vst.msk [vmem:[#allocation2 + $0xf0] sm:$0xff] %vm517_vm5, %v500_v30  ;;  %1001 = vmatmul.mubr.f32.gmra.mrb[12].mxu1 %v789_v33 }
 0x14c   :  { %525 = vst.msk [vmem:[#allocation2 + $0x70] sm:$0xff] %vm517_vm5, %v484_v31  ;;  %961 = vmatmul.mubr.f32.gmra.mrb[12].mxu0 %v773_v32  ;;  %1155 = vmatprep.mubr.msk.f32.mxu1 %vm31_vm0, %v792_v29 }
 0x14d   :  { %1147 = vmatprep.mubr.msk.f32.mxu0 %vm31_vm0, %v776_v28 }
 0x14e   :  { %v598_v34 = vpop.permute.xlu1 %597 }
 0x14f   :  { %v582_v35 = vpop.permute.xlu0 %581  ;;  %631 = vst.msk [vmem:[#allocation2 + $0xf0] sm:$0xff] %vm615_vm6, %v598_v34 }
 0x150   :  { %623 = vst.msk [vmem:[#allocation2 + $0x70] sm:$0xff] %vm615_vm6, %v582_v35 }
 0x152   :  { %v695_v36 = vpop.permute.xlu1 %694 }
 0x153   :  { %v679_v37 = vpop.permute.xlu0 %678  ;;  %728 = vst.msk [vmem:[#allocation2 + $0xf0] sm:$0xff] %vm712_vm7, %v695_v36 }
 0x154   :  { %720 = vst.msk [vmem:[#allocation2 + $0x70] sm:$0xff] %vm712_vm7, %v679_v37 }
 0x15a   :  { %v791_v39 = vld [vmem:[#allocation2 + $0xf0] sm:$0xff] }
 0x15b   :  { %v775_v38 = vld [vmem:[#allocation2 + $0x70] sm:$0xff]  ;;  %1006 = vmatmul.mubr.f32.gmra.mrb[14].mxu1 %v791_v39 }
 0x15c   :  { %966 = vmatmul.mubr.f32.gmra.mrb[14].mxu0 %v775_v38 }
 0x176   :  { %v932_v41 = vpop.f32.mrb[0].mxu0 }
 0x177   :  { %v972_v42 = vpop.f32.mrb[0].mxu1  ;;  %v933_v43 = vadd.f32 %v1922_v40, %v932_v41  ;;  %v934_v45 = vpop.f32.mrb[1].mxu0 }
 0x178   :  { %v973_v44 = vadd.f32 %v1922_v40, %v972_v42  ;;  %v974_v46 = vpop.f32.mrb[1].mxu1 }
 0x179   :  { %1011 = vst [vmem:[#allocation3] sm:$0xff] %v933_v43 }
 0x17a   :  { %1019 = vst [vmem:[#allocation3 + $0x40] sm:$0xff] %v973_v44 }
 0x192   :  { %v937_v47 = vpop.f32.mrb[2].mxu0 }
 0x193   :  { %v977_v48 = vpop.f32.mrb[2].mxu1  ;;  %v938_v49 = vadd.f32 %v1922_v40, %v937_v47  ;;  %v939_v51 = vpop.f32.mrb[3].mxu0 }
 0x194   :  { %v978_v50 = vadd.f32 %v1922_v40, %v977_v48  ;;  %v979_v52 = vpop.f32.mrb[3].mxu1 }
 0x195   :  { %1012 = vst [vmem:[#allocation3 + $0x8] sm:$0xff] %v938_v49 }
 0x196   :  { %1020 = vst [vmem:[#allocation3 + $0x48] sm:$0xff] %v978_v50 }
 0x1ae   :  { %v942_v53 = vpop.f32.mrb[4].mxu0 }
 0x1af   :  { %v982_v54 = vpop.f32.mrb[4].mxu1  ;;  %v943_v55 = vadd.f32 %v1922_v40, %v942_v53  ;;  %v944_v57 = vpop.f32.mrb[5].mxu0 }
 0x1b0   :  { %v983_v56 = vadd.f32 %v1922_v40, %v982_v54  ;;  %v984_v58 = vpop.f32.mrb[5].mxu1 }
 0x1b1   :  { %1013 = vst [vmem:[#allocation3 + $0x10] sm:$0xff] %v943_v55 }
 0x1b2   :  { %1021 = vst [vmem:[#allocation3 + $0x50] sm:$0xff] %v983_v56 }
 0x1ca   :  { %v947_v59 = vpop.f32.mrb[6].mxu0 }
 0x1cb   :  { %v987_v60 = vpop.f32.mrb[6].mxu1  ;;  %v948_v61 = vadd.f32 %v1922_v40, %v947_v59  ;;  %v949_v63 = vpop.f32.mrb[7].mxu0 }
 0x1cc   :  { %v988_v62 = vadd.f32 %v1922_v40, %v987_v60  ;;  %v989_v0 = vpop.f32.mrb[7].mxu1 }
 0x1cd   :  { %1014 = vst [vmem:[#allocation3 + $0x18] sm:$0xff] %v948_v61 }
 0x1ce   :  { %1022 = vst [vmem:[#allocation3 + $0x58] sm:$0xff] %v988_v62 }
 0x1e6   :  { %v952_v1 = vpop.f32.mrb[8].mxu0 }
 0x1e7   :  { %v992_v4 = vpop.f32.mrb[8].mxu1  ;;  %v953_v5 = vadd.f32 %v1922_v40, %v952_v1  ;;  %v954_v3 = vpop.f32.mrb[9].mxu0 }
 0x1e8   :  { %v993_v2 = vadd.f32 %v1922_v40, %v992_v4  ;;  %v994_v8 = vpop.f32.mrb[9].mxu1 }
 0x1e9   :  { %1015 = vst [vmem:[#allocation3 + $0x20] sm:$0xff] %v953_v5 }
 0x1ea   :  { %1023 = vst [vmem:[#allocation3 + $0x60] sm:$0xff] %v993_v2 }
 0x202   :  { %v997_v10 = vpop.f32.mrb[10].mxu1 }
 0x203   :  { %v957_v9 = vpop.f32.mrb[10].mxu0  ;;  %v998_v12 = vadd.f32 %v1922_v40, %v997_v10  ;;  %v999_v14 = vpop.f32.mrb[11].mxu1 }
 0x204   :  { %v958_v11 = vadd.f32 %v1922_v40, %v957_v9  ;;  %v959_v13 = vpop.f32.mrb[11].mxu0 }
 0x205   :  { %1024 = vst [vmem:[#allocation3 + $0x68] sm:$0xff] %v998_v12 }
 0x206   :  { %1016 = vst [vmem:[#allocation3 + $0x28] sm:$0xff] %v958_v11 }
 0x21e   :  { %v1002_v16 = vpop.f32.mrb[12].mxu1 }
 0x21f   :  { %v962_v15 = vpop.f32.mrb[12].mxu0  ;;  %v1003_v18 = vadd.f32 %v1922_v40, %v1002_v16  ;;  %v1004_v20 = vpop.f32.mrb[13].mxu1 }
 0x220   :  { %v963_v17 = vadd.f32 %v1922_v40, %v962_v15  ;;  %v964_v19 = vpop.f32.mrb[13].mxu0 }
 0x221   :  { %1025 = vst [vmem:[#allocation3 + $0x70] sm:$0xff] %v1003_v18 }
 0x222   :  { %1017 = vst [vmem:[#allocation3 + $0x30] sm:$0xff] %v963_v17 }
 0x22e   :  { %v1007_v22 = vpop.f32.mrb[14].mxu1 }
 0x22f   :  { %v967_v21 = vpop.f32.mrb[14].mxu0  ;;  %v1008_v24 = vadd.f32 %v1922_v40, %v1007_v22  ;;  %v1009_v6 = vpop.f32.mrb[15].mxu1 }
 0x230   :  { %v968_v23 = vadd.f32 %v1922_v40, %v967_v21  ;;  %v969_v25 = vpop.f32.mrb[15].mxu0 }
 0x231   :  { %1026 = vst [vmem:[#allocation3 + $0x78] sm:$0xff] %v1008_v24 }
 0x232   :  { %1018 = vst [vmem:[#allocation3 + $0x38] sm:$0xff] %v968_v23 }
 0x233   :  { %1223 = shalt.err (!%p1220_p4)
}
 0x234   :  { %s1224_s10 = scalar_lea.hbm %s1955_s3, 2048 }
 0x235   :  { %p1225_p5 = scmp.ne.s32.totalorder %s1955_s3, %s1224_s10  ;;  %p1228_p6 = scmp.lt.u32.totalorder %s1224_s10, %s1955_s3 }
 0x237   :  { %p1230_p7 = pnand %p1228_p6, %p1225_p5 }
 0x239   :  { %1233 = shalt.err (!%p1230_p7)
}
 0x23a   :  { %s1245_s14 = smov 128   ;;  %s1246_s18 = smov 8  }
 0x23b   :  { %1038 = dma.vmem_to_hbm [thread:$0]  %s1033_s24, 2048, %s1955_s3, [#allocation4], %s1245_s14, %s1245_s14, %s1246_s18  }
 0x23c   :  { %1234 = dma.done.wait [#allocation4], 2048  }
 0x23d   :  { %1235 = vsyncadd [#allocation4], 4294965248 }
 0x23e   :  { %1042 = vsyncpa [#allocation4], 1 }

</bundles_post_ra>
